<compile_context>
chip_gen: v7x
topology: tpu7x:2x2x1
jax: 0.10.0
libtpu: 0.0.40
codegen_flags: <defaults>
</compile_context>

<pallas_src>
import functools

import jax
import jax.numpy as jnp
from jax import lax
from jax.experimental import pallas as pl
from jax.experimental.pallas import tpu as pltpu


def _round_up(x, m):
    return -(-x // m) * m


# --------------------------------------------------------------------------
# Kernel A: per-batch-tile gather (one-hot MXU matmul) + score + data loss,
#           plus the (small, VMEM-resident) relation-table penalty.
# Grid: (num_batch_tiles,)  — axis is a reduction into an SMEM accumulator.
# --------------------------------------------------------------------------
def _score_loss_kernel(heads_ref, tails_ref, rels_ref,      # VMEM (tile_b, 1) i32
                       labels_ref, mask_ref,                 # VMEM (tile_b, 1) f32
                       head_w_ref, tail_w_ref,               # VMEM (n_ent_p, depth) f32
                       rel_w_ref, rel_inv_w_ref,             # VMEM (n_rel_p, depth) f32
                       out_ref,                              # SMEM (2,) f32
                       acc_ref,                              # SMEM (1,) f32 scratch
                       *, batch):
    b = pl.program_id(0)
    nb = pl.num_programs(0)
    eps2 = jnp.float32(1e-24)   # max(norm, 1e-12)^2 == max(ss, 1e-24)

    @pl.when(b == 0)
    def _init():
        acc_ref[0] = jnp.float32(0.0)

    tile_b = heads_ref.shape[0]
    n_ent_p = head_w_ref.shape[0]
    n_rel_p = rel_w_ref.shape[0]

    heads = heads_ref[...]      # (tile_b, 1) int32
    tails = tails_ref[...]
    rels = rels_ref[...]

    # ---- vectorized gather: one-hot (iota == idx) matmuls on the MXU.
    ent_iota = lax.broadcasted_iota(jnp.int32, (tile_b, n_ent_p), 1)
    rel_iota = lax.broadcasted_iota(jnp.int32, (tile_b, n_rel_p), 1)
    oh_h = (ent_iota == heads).astype(jnp.float32)   # (tile_b, n_ent_p)
    oh_t = (ent_iota == tails).astype(jnp.float32)
    oh_r = (rel_iota == rels).astype(jnp.float32)    # (tile_b, n_rel_p)

    hw = head_w_ref[...]
    tw = tail_w_ref[...]
    h1 = jnp.dot(oh_h, hw, preferred_element_type=jnp.float32)            # head_w[heads]
    h2 = jnp.dot(oh_t, hw, preferred_element_type=jnp.float32)            # head_w[tails]
    t1 = jnp.dot(oh_t, tw, preferred_element_type=jnp.float32)            # tail_w[tails]
    t2 = jnp.dot(oh_h, tw, preferred_element_type=jnp.float32)            # tail_w[heads]
    r1 = jnp.dot(oh_r, rel_w_ref[...], preferred_element_type=jnp.float32)
    r2 = jnp.dot(oh_r, rel_inv_w_ref[...], preferred_element_type=jnp.float32)

    # ---- L2-normalize only the gathered head/tail rows (== normalizing the
    # full table then gathering).  rsqrt rides the EUP slot.
    def rownorm(x):
        ss = jnp.sum(x * x, axis=1, keepdims=True)
        return x * lax.rsqrt(jnp.maximum(ss, eps2))

    h1 = rownorm(h1)
    h2 = rownorm(h2)
    t1 = rownorm(t1)
    t2 = rownorm(t2)

    # ---- score, clip, softplus(-label*score); masked sum for padded rows.
    score = 0.5 * (jnp.sum(h1 * r1 * t1, axis=1, keepdims=True)
                   + jnp.sum(h2 * r2 * t2, axis=1, keepdims=True))        # (tile_b, 1)
    score = jnp.clip(score, -20.0, 20.0)
    loss_vec = jnp.logaddexp(-labels_ref[...] * score, 0.0) * mask_ref[...]
    acc_ref[0] = acc_ref[0] + jnp.sum(loss_vec)

    @pl.when(b == nb - 1)
    def _finalize():
        rw = rel_w_ref[...]
        riw = rel_inv_w_ref[...]
        out_ref[0] = acc_ref[0] / jnp.float32(batch)       # mean data loss
        out_ref[1] = jnp.sum(rw * rw) + jnp.sum(riw * riw)  # rel-table penalty


# --------------------------------------------------------------------------
# Kernel B: streamed entity-table penalty, gridded over row tiles.
# Σ_rows ||normalize(row)||² == Σ_rows ss / max(ss, eps²).
# --------------------------------------------------------------------------
def _ent_penalty_kernel(head_w_ref, tail_w_ref,    # VMEM (tile_e, depth) f32
                        out_ref,                   # SMEM (1,) f32
                        acc_ref):                  # SMEM (1,) f32 scratch
    e = pl.program_id(0)
    ne = pl.num_programs(0)
    eps2 = jnp.float32(1e-24)

    @pl.when(e == 0)
    def _init():
        acc_ref[0] = jnp.float32(0.0)

    hw = head_w_ref[...]
    tw = tail_w_ref[...]
    hss = jnp.sum(hw * hw, axis=1, keepdims=True)
    tss = jnp.sum(tw * tw, axis=1, keepdims=True)
    acc_ref[0] = acc_ref[0] + (jnp.sum(hss / jnp.maximum(hss, eps2))
                               + jnp.sum(tss / jnp.maximum(tss, eps2)))

    @pl.when(e == ne - 1)
    def _finalize():
        out_ref[0] = acc_ref[0]


# --------------------------------------------------------------------------
# Wrapper
# --------------------------------------------------------------------------
def _vmem_limit(need_bytes):
    try:
        cap = int(pltpu.get_tpu_info().vmem_capacity_bytes)
    except Exception:
        cap = 64 << 20  # conservative: v7x per-TC physical VMEM
    limit = max(int(need_bytes) + (8 << 20), 32 << 20)
    return int(min(limit, cap - (2 << 20)))


def simple_forward(x, labels, head_w, tail_w, rel_w, rel_inv_w, *, reg, num_batch):
    batch = x.shape[0]
    n_ent, depth = head_w.shape
    n_rel = rel_w.shape[0]

    # --- tiling / padding parameters (sublane-multiple tiles).
    tile_b = min(256, _round_up(batch, 8))
    batch_p = _round_up(batch, tile_b)
    tile_e = min(512, _round_up(n_ent, 8))
    n_ent_p = _round_up(n_ent, tile_e)
    n_rel_p = _round_up(n_rel, 8)

    x = x.astype(jnp.int32)
    labels = labels.astype(jnp.float32)

    def pad_col(vals, rows, dtype):
        out = jnp.zeros((rows, 1), dtype)
        return out.at[:vals.shape[0], 0].set(vals.astype(dtype))

    def pad_tbl(w, rows):
        w = w.astype(jnp.float32)
        if w.shape[0] == rows:
            return w
        return jnp.zeros((rows, w.shape[1]), jnp.float32).at[:w.shape[0]].set(w)

    heads_p = pad_col(x[:, 0], batch_p, jnp.int32)
    tails_p = pad_col(x[:, 1], batch_p, jnp.int32)
    rels_p = pad_col(x[:, 2], batch_p, jnp.int32)
    labels_p = pad_col(labels, batch_p, jnp.float32)
    mask_p = pad_col(jnp.ones((batch,), jnp.float32), batch_p, jnp.float32)

    head_w_p = pad_tbl(head_w, n_ent_p)
    tail_w_p = pad_tbl(tail_w, n_ent_p)
    rel_w_p = pad_tbl(rel_w, n_rel_p)
    rel_inv_w_p = pad_tbl(rel_inv_w, n_rel_p)

    dpad = _round_up(depth, 128)
    # Kernel A VMEM estimate: double-buffered resident tables + per-tile blocks
    # + one-hot / gathered-row intermediates (spill headroom).
    need_a = 4 * (2 * (2 * n_ent_p + 2 * n_rel_p) * dpad
                  + 2 * 5 * tile_b * 128
                  + 2 * tile_b * _round_up(n_ent_p, 128)
                  + tile_b * _round_up(n_rel_p, 128)
                  + 8 * tile_b * dpad)
    # Kernel B VMEM estimate: double-buffered (tile_e, depth) blocks of 2 tables.
    need_b = 4 * (2 * 2 * tile_e * dpad)

    smem_out = pl.BlockSpec(memory_space=pltpu.MemorySpace.SMEM)
    idx_spec = pl.BlockSpec((tile_b, 1), lambda b: (b, 0))
    ent_tbl_spec = pl.BlockSpec((n_ent_p, depth), lambda b: (0, 0))
    rel_tbl_spec = pl.BlockSpec((n_rel_p, depth), lambda b: (0, 0))

    out_a = pl.pallas_call(
        functools.partial(_score_loss_kernel, batch=batch),
        out_shape=jax.ShapeDtypeStruct((2,), jnp.float32),
        grid_spec=pltpu.PrefetchScalarGridSpec(
            num_scalar_prefetch=0,
            grid=(batch_p // tile_b,),
            in_specs=[idx_spec, idx_spec, idx_spec, idx_spec, idx_spec,
                      ent_tbl_spec, ent_tbl_spec, rel_tbl_spec, rel_tbl_spec],
            out_specs=smem_out,
            scratch_shapes=[pltpu.SMEM((1,), jnp.float32)]),
        compiler_params=pltpu.CompilerParams(
            dimension_semantics=("arbitrary",),
            vmem_limit_bytes=_vmem_limit(need_a)),
    )(heads_p, tails_p, rels_p, labels_p, mask_p,
      head_w_p, tail_w_p, rel_w_p, rel_inv_w_p)

    ent_tile_spec = pl.BlockSpec((tile_e, depth), lambda e: (e, 0))
    out_b = pl.pallas_call(
        _ent_penalty_kernel,
        out_shape=jax.ShapeDtypeStruct((1,), jnp.float32),
        grid_spec=pltpu.PrefetchScalarGridSpec(
            num_scalar_prefetch=0,
            grid=(n_ent_p // tile_e,),
            in_specs=[ent_tile_spec, ent_tile_spec],
            out_specs=smem_out,
            scratch_shapes=[pltpu.SMEM((1,), jnp.float32)]),
        compiler_params=pltpu.CompilerParams(
            dimension_semantics=("arbitrary",),
            vmem_limit_bytes=_vmem_limit(need_b)),
    )(head_w_p, tail_w_p)

    data_loss = out_a[0]
    penalty = (out_b[0] + out_a[1]) / jnp.float32(num_batch)
    return data_loss + jnp.float32(reg) * penalty


def simple_forward_ref(x, labels, head_w, tail_w, rel_w, rel_inv_w, *, reg, num_batch):
    """Pure-JAX reference mirroring the PyTorch module's forward()."""
    def l2norm(w):
        return w / jnp.maximum(jnp.linalg.norm(w, axis=1, keepdims=True), 1e-12)
    hw, tw = l2norm(head_w), l2norm(tail_w)
    heads, tails, rels = x[:, 0], x[:, 1], x[:, 2]
    h1, h2 = hw[heads], hw[tails]
    t1, t2 = tw[tails], tw[heads]
    r1, r2 = rel_w[rels], rel_inv_w[rels]
    score = (jnp.sum(h1 * r1 * t1, axis=1) + jnp.sum(h2 * r2 * t2, axis=1)) / 2.0
    score = jnp.clip(score, -20.0, 20.0)
    penalty = (jnp.sum(hw ** 2) + jnp.sum(tw ** 2)
               + jnp.sum(rel_w ** 2) + jnp.sum(rel_inv_w ** 2)) / num_batch
    return jnp.mean(jax.nn.softplus(-labels * score)) + reg * penalty


if __name__ == "__main__":
    # Small, deterministic synthetic setup consistent with SimplE.__init__.
    n_ent, n_rel, depth = 32, 8, 32
    batch, num_batch, reg, margin = 8, 4, 0.01, 1.0  # margin unused in forward

    key = jax.random.PRNGKey(0)
    k_hw, k_tw, k_rw, k_riw, k_x, k_lab = jax.random.split(key, 6)

    def xavier_normal(k, n, d):
        std = (2.0 / (n + d)) ** 0.5
        return std * jax.random.normal(k, (n, d), dtype=jnp.float32)

    head_w = xavier_normal(k_hw, n_ent, depth)
    tail_w = xavier_normal(k_tw, n_ent, depth)
    rel_w = xavier_normal(k_rw, n_rel, depth)
    rel_inv_w = xavier_normal(k_riw, n_rel, depth)
    # initialize(): rel / rel_inv tables are L2-normalized per row once.
    rel_w = rel_w / jnp.linalg.norm(rel_w, axis=1, keepdims=True)
    rel_inv_w = rel_inv_w / jnp.linalg.norm(rel_inv_w, axis=1, keepdims=True)

    ents = jax.random.randint(k_x, (batch, 2), 0, n_ent, dtype=jnp.int32)
    rels = jax.random.randint(jax.random.fold_in(k_x, 1), (batch, 1), 0, n_rel,
                              dtype=jnp.int32)
    x = jnp.concatenate([ents, rels], axis=1)          # (batch, 3) [head, tail, rel]
    labels = jnp.where(jax.random.bernoulli(k_lab, 0.5, (batch,)),
                       1.0, -1.0).astype(jnp.float32)  # (batch,)

    loss = simple_forward(x, labels, head_w, tail_w, rel_w, rel_inv_w,
                          reg=reg, num_batch=num_batch)
    loss = jax.block_until_ready(loss)

    ref = simple_forward_ref(x, labels, head_w, tail_w, rel_w, rel_inv_w,
                             reg=reg, num_batch=num_batch)
    assert jnp.allclose(loss, ref, atol=1e-4, rtol=1e-4), (loss, ref)

    print("KERNEL_OK")
</pallas_src>

<mosaic_0001>
module attributes {stable_mosaic.version = 11 : i64} {
  func.func @_score_loss_kernel(%arg0: i32, %arg1: memref<8x1xi32, #tpu.memory_space<vmem>>, %arg2: memref<8x1xi32, #tpu.memory_space<vmem>>, %arg3: memref<8x1xi32, #tpu.memory_space<vmem>>, %arg4: memref<8x1xf32, #tpu.memory_space<vmem>>, %arg5: memref<8x1xf32, #tpu.memory_space<vmem>>, %arg6: memref<32x32xf32, #tpu.memory_space<vmem>>, %arg7: memref<32x32xf32, #tpu.memory_space<vmem>>, %arg8: memref<8x32xf32, #tpu.memory_space<vmem>>, %arg9: memref<8x32xf32, #tpu.memory_space<vmem>>, %arg10: memref<2xf32, #tpu.memory_space<smem>>, %arg11: memref<1xf32, #tpu.memory_space<smem>>) attributes {dimension_semantics = [#tpu.dimension_semantics<arbitrary>], iteration_bounds = array<i64: 1>, scalar_prefetch = 0 : i64, scratch_operands = 1 : i64, tpu.core_type = #tpu.core_type<tc>, window_params = [{transform_indices = @transform_0, window_bounds = array<i64: 8, 1>}, {transform_indices = @transform_1, window_bounds = array<i64: 8, 1>}, {transform_indices = @transform_2, window_bounds = array<i64: 8, 1>}, {transform_indices = @transform_3, window_bounds = array<i64: 8, 1>}, {transform_indices = @transform_4, window_bounds = array<i64: 8, 1>}, {pipeline_mode = #tpu.pipeline_mode<synchronous>, transform_indices = @transform_5, window_bounds = array<i64: 32, 32>}, {pipeline_mode = #tpu.pipeline_mode<synchronous>, transform_indices = @transform_6, window_bounds = array<i64: 32, 32>}, {pipeline_mode = #tpu.pipeline_mode<synchronous>, transform_indices = @transform_7, window_bounds = array<i64: 8, 32>}, {pipeline_mode = #tpu.pipeline_mode<synchronous>, transform_indices = @transform_8, window_bounds = array<i64: 8, 32>}, {transform_indices = @transform_9, window_bounds = array<i64: 2>}]} {
    %c0_i32 = arith.constant 0 : i32
    %0 = arith.cmpi eq, %arg0, %c0_i32 : i32
    %1 = arith.extui %0 : i1 to i32
    %c0_i32_0 = arith.constant 0 : i32
    %2 = arith.cmpi ne, %1, %c0_i32_0 : i32
    scf.if %2 {
      %cst_44 = arith.constant 0.000000e+00 : f32
      %c0_45 = arith.constant 0 : index
      %107 = memref.load %arg11[%c0_45] : memref<1xf32, #tpu.memory_space<smem>>
      memref.store %cst_44, %arg11[%c0_45] : memref<1xf32, #tpu.memory_space<smem>>
    } else {
    }
    %c0 = arith.constant 0 : index
    %c0_1 = arith.constant 0 : index
    %3 = vector.load %arg1[%c0, %c0_1] : memref<8x1xi32, #tpu.memory_space<vmem>>, vector<8x1xi32>
    %c0_2 = arith.constant 0 : index
    %c0_3 = arith.constant 0 : index
    %4 = vector.load %arg2[%c0_2, %c0_3] : memref<8x1xi32, #tpu.memory_space<vmem>>, vector<8x1xi32>
    %c0_4 = arith.constant 0 : index
    %c0_5 = arith.constant 0 : index
    %5 = vector.load %arg3[%c0_4, %c0_5] : memref<8x1xi32, #tpu.memory_space<vmem>>, vector<8x1xi32>
    %6 = tpu.iota {dimensions = array<i32: 1>} : vector<8x32xi32>
    %7 = tpu.iota {dimensions = array<i32: 1>} : vector<8x8xi32>
    %8 = vector.broadcast %3 : vector<8x1xi32> to vector<8x32xi32>
    %9 = arith.cmpi eq, %6, %8 : vector<8x32xi32>
    %10 = arith.extui %9 : vector<8x32xi1> to vector<8x32xi32>
    %11 = arith.sitofp %10 : vector<8x32xi32> to vector<8x32xf32>
    %12 = vector.broadcast %4 : vector<8x1xi32> to vector<8x32xi32>
    %13 = arith.cmpi eq, %6, %12 : vector<8x32xi32>
    %14 = arith.extui %13 : vector<8x32xi1> to vector<8x32xi32>
    %15 = arith.sitofp %14 : vector<8x32xi32> to vector<8x32xf32>
    %16 = vector.broadcast %5 : vector<8x1xi32> to vector<8x8xi32>
    %17 = arith.cmpi eq, %7, %16 : vector<8x8xi32>
    %18 = arith.extui %17 : vector<8x8xi1> to vector<8x8xi32>
    %19 = arith.sitofp %18 : vector<8x8xi32> to vector<8x8xf32>
    %c0_6 = arith.constant 0 : index
    %c0_7 = arith.constant 0 : index
    %20 = vector.load %arg6[%c0_6, %c0_7] : memref<32x32xf32, #tpu.memory_space<vmem>>, vector<32x32xf32>
    %c0_8 = arith.constant 0 : index
    %c0_9 = arith.constant 0 : index
    %21 = vector.load %arg7[%c0_8, %c0_9] : memref<32x32xf32, #tpu.memory_space<vmem>>, vector<32x32xf32>
    %cst = arith.constant dense<0.000000e+00> : vector<8x32xf32>
    %22 = tpu.matmul %11, %20, %cst {dimension_numbers = #tpu.dot_dimension_numbers<[1], [0], [0], [1], [0, 0, 1, 1], [], []>} : vector<8x32xf32>, vector<32x32xf32>, vector<8x32xf32> -> vector<8x32xf32>
    %cst_10 = arith.constant dense<0.000000e+00> : vector<8x32xf32>
    %23 = tpu.matmul %15, %20, %cst_10 {dimension_numbers = #tpu.dot_dimension_numbers<[1], [0], [0], [1], [0, 0, 1, 1], [], []>} : vector<8x32xf32>, vector<32x32xf32>, vector<8x32xf32> -> vector<8x32xf32>
    %cst_11 = arith.constant dense<0.000000e+00> : vector<8x32xf32>
    %24 = tpu.matmul %15, %21, %cst_11 {dimension_numbers = #tpu.dot_dimension_numbers<[1], [0], [0], [1], [0, 0, 1, 1], [], []>} : vector<8x32xf32>, vector<32x32xf32>, vector<8x32xf32> -> vector<8x32xf32>
    %cst_12 = arith.constant dense<0.000000e+00> : vector<8x32xf32>
    %25 = tpu.matmul %11, %21, %cst_12 {dimension_numbers = #tpu.dot_dimension_numbers<[1], [0], [0], [1], [0, 0, 1, 1], [], []>} : vector<8x32xf32>, vector<32x32xf32>, vector<8x32xf32> -> vector<8x32xf32>
    %c0_13 = arith.constant 0 : index
    %c0_14 = arith.constant 0 : index
    %26 = vector.load %arg8[%c0_13, %c0_14] : memref<8x32xf32, #tpu.memory_space<vmem>>, vector<8x32xf32>
    %cst_15 = arith.constant dense<0.000000e+00> : vector<8x32xf32>
    %27 = tpu.matmul %19, %26, %cst_15 {dimension_numbers = #tpu.dot_dimension_numbers<[1], [0], [0], [1], [0, 0, 1, 1], [], []>} : vector<8x8xf32>, vector<8x32xf32>, vector<8x32xf32> -> vector<8x32xf32>
    %c0_16 = arith.constant 0 : index
    %c0_17 = arith.constant 0 : index
    %28 = vector.load %arg9[%c0_16, %c0_17] : memref<8x32xf32, #tpu.memory_space<vmem>>, vector<8x32xf32>
    %cst_18 = arith.constant dense<0.000000e+00> : vector<8x32xf32>
    %29 = tpu.matmul %19, %28, %cst_18 {dimension_numbers = #tpu.dot_dimension_numbers<[1], [0], [0], [1], [0, 0, 1, 1], [], []>} : vector<8x8xf32>, vector<8x32xf32>, vector<8x32xf32> -> vector<8x32xf32>
    %30 = arith.mulf %22, %22 : vector<8x32xf32>
    %cst_19 = arith.constant dense<0.000000e+00> : vector<8xf32>
    %31 = vector.multi_reduction <add>, %30, %cst_19 [1] : vector<8x32xf32> to vector<8xf32>
    %32 = vector.shape_cast %31 : vector<8xf32> to vector<8x1xf32>
    %cst_20 = arith.constant 1.000000e-24 : f32
    %33 = vector.broadcast %cst_20 : f32 to vector<8x1xf32>
    %34 = arith.maximumf %32, %33 : vector<8x1xf32>
    %35 = math.rsqrt %34 : vector<8x1xf32>
    %36 = vector.broadcast %35 : vector<8x1xf32> to vector<8x32xf32>
    %37 = arith.mulf %22, %36 : vector<8x32xf32>
    %38 = arith.mulf %23, %23 : vector<8x32xf32>
    %cst_21 = arith.constant dense<0.000000e+00> : vector<8xf32>
    %39 = vector.multi_reduction <add>, %38, %cst_21 [1] : vector<8x32xf32> to vector<8xf32>
    %40 = vector.shape_cast %39 : vector<8xf32> to vector<8x1xf32>
    %cst_22 = arith.constant 1.000000e-24 : f32
    %41 = vector.broadcast %cst_22 : f32 to vector<8x1xf32>
    %42 = arith.maximumf %40, %41 : vector<8x1xf32>
    %43 = math.rsqrt %42 : vector<8x1xf32>
    %44 = vector.broadcast %43 : vector<8x1xf32> to vector<8x32xf32>
    %45 = arith.mulf %23, %44 : vector<8x32xf32>
    %46 = arith.mulf %24, %24 : vector<8x32xf32>
    %cst_23 = arith.constant dense<0.000000e+00> : vector<8xf32>
    %47 = vector.multi_reduction <add>, %46, %cst_23 [1] : vector<8x32xf32> to vector<8xf32>
    %48 = vector.shape_cast %47 : vector<8xf32> to vector<8x1xf32>
    %cst_24 = arith.constant 1.000000e-24 : f32
    %49 = vector.broadcast %cst_24 : f32 to vector<8x1xf32>
    %50 = arith.maximumf %48, %49 : vector<8x1xf32>
    %51 = math.rsqrt %50 : vector<8x1xf32>
    %52 = vector.broadcast %51 : vector<8x1xf32> to vector<8x32xf32>
    %53 = arith.mulf %24, %52 : vector<8x32xf32>
    %54 = arith.mulf %25, %25 : vector<8x32xf32>
    %cst_25 = arith.constant dense<0.000000e+00> : vector<8xf32>
    %55 = vector.multi_reduction <add>, %54, %cst_25 [1] : vector<8x32xf32> to vector<8xf32>
    %56 = vector.shape_cast %55 : vector<8xf32> to vector<8x1xf32>
    %cst_26 = arith.constant 1.000000e-24 : f32
    %57 = vector.broadcast %cst_26 : f32 to vector<8x1xf32>
    %58 = arith.maximumf %56, %57 : vector<8x1xf32>
    %59 = math.rsqrt %58 : vector<8x1xf32>
    %60 = vector.broadcast %59 : vector<8x1xf32> to vector<8x32xf32>
    %61 = arith.mulf %25, %60 : vector<8x32xf32>
    %62 = arith.mulf %37, %27 : vector<8x32xf32>
    %63 = arith.mulf %62, %53 : vector<8x32xf32>
    %cst_27 = arith.constant dense<0.000000e+00> : vector<8xf32>
    %64 = vector.multi_reduction <add>, %63, %cst_27 [1] : vector<8x32xf32> to vector<8xf32>
    %65 = vector.shape_cast %64 : vector<8xf32> to vector<8x1xf32>
    %66 = arith.mulf %45, %29 : vector<8x32xf32>
    %67 = arith.mulf %66, %61 : vector<8x32xf32>
    %cst_28 = arith.constant dense<0.000000e+00> : vector<8xf32>
    %68 = vector.multi_reduction <add>, %67, %cst_28 [1] : vector<8x32xf32> to vector<8xf32>
    %69 = vector.shape_cast %68 : vector<8xf32> to vector<8x1xf32>
    %70 = arith.addf %65, %69 : vector<8x1xf32>
    %cst_29 = arith.constant 5.000000e-01 : f32
    %71 = vector.broadcast %cst_29 : f32 to vector<8x1xf32>
    %72 = arith.mulf %71, %70 : vector<8x1xf32>
    %cst_30 = arith.constant -2.000000e+01 : f32
    %cst_31 = arith.constant 2.000000e+01 : f32
    %73 = vector.broadcast %cst_30 : f32 to vector<8x1xf32>
    %74 = arith.maximumf %73, %72 : vector<8x1xf32>
    %75 = vector.broadcast %cst_31 : f32 to vector<8x1xf32>
    %76 = arith.minimumf %75, %74 : vector<8x1xf32>
    %c0_32 = arith.constant 0 : index
    %c0_33 = arith.constant 0 : index
    %77 = vector.load %arg4[%c0_32, %c0_33] : memref<8x1xf32, #tpu.memory_space<vmem>>, vector<8x1xf32>
    %cst_34 = arith.constant 0.000000e+00 : f32
    %78 = vector.broadcast %cst_34 : f32 to vector<8x1xf32>
    %79 = arith.subf %78, %77 : vector<8x1xf32>
    %80 = arith.mulf %79, %76 : vector<8x1xf32>
    %cst_35 = arith.constant 0.000000e+00 : f32
    %81 = vector.broadcast %cst_35 : f32 to vector<8x1xf32>
    %82 = arith.maximumf %80, %81 : vector<8x1xf32>
    %83 = vector.broadcast %cst_35 : f32 to vector<8x1xf32>
    %84 = arith.subf %80, %83 : vector<8x1xf32>
    %85 = arith.cmpf one, %84, %84 : vector<8x1xf32>
    %86 = vector.broadcast %cst_35 : f32 to vector<8x1xf32>
    %87 = arith.addf %80, %86 : vector<8x1xf32>
    %88 = math.absf %84 : vector<8x1xf32>
    %cst_36 = arith.constant 0.000000e+00 : f32
    %89 = vector.broadcast %cst_36 : f32 to vector<8x1xf32>
    %90 = arith.subf %89, %88 : vector<8x1xf32>
    %91 = math.exp %90 : vector<8x1xf32>
    %92 = math.log1p %91 : vector<8x1xf32>
    %93 = arith.addf %82, %92 : vector<8x1xf32>
    %94 = arith.select %85, %87, %93 : vector<8x1xi1>, vector<8x1xf32>
    %c0_37 = arith.constant 0 : index
    %c0_38 = arith.constant 0 : index
    %95 = vector.load %arg5[%c0_37, %c0_38] : memref<8x1xf32, #tpu.memory_space<vmem>>, vector<8x1xf32>
    %96 = arith.mulf %94, %95 : vector<8x1xf32>
    %c0_39 = arith.constant 0 : index
    %97 = memref.load %arg11[%c0_39] : memref<1xf32, #tpu.memory_space<smem>>
    %98 = vector.shape_cast %96 : vector<8x1xf32> to vector<1x8x1xf32>
    %cst_40 = arith.constant dense<0.000000e+00> : vector<1xf32>
    %99 = vector.multi_reduction <add>, %98, %cst_40 [1, 2] : vector<1x8x1xf32> to vector<1xf32>
    %100 = vector.shape_cast %99 : vector<1xf32> to vector<1x1x1xf32>
    %101 = vector.extract %100[0, 0, 0] : f32 from vector<1x1x1xf32>
    %102 = arith.addf %97, %101 : f32
    %c0_41 = arith.constant 0 : index
    %103 = memref.load %arg11[%c0_41] : memref<1xf32, #tpu.memory_space<smem>>
    memref.store %102, %arg11[%c0_41] : memref<1xf32, #tpu.memory_space<smem>>
    %c0_i32_42 = arith.constant 0 : i32
    %104 = arith.cmpi eq, %arg0, %c0_i32_42 : i32
    %105 = arith.extui %104 : i1 to i32
    %c0_i32_43 = arith.constant 0 : i32
    %106 = arith.cmpi ne, %105, %c0_i32_43 : i32
    scf.if %106 {
      %c0_44 = arith.constant 0 : index
      %c0_45 = arith.constant 0 : index
      %107 = vector.load %arg8[%c0_44, %c0_45] : memref<8x32xf32, #tpu.memory_space<vmem>>, vector<8x32xf32>
      %c0_46 = arith.constant 0 : index
      %c0_47 = arith.constant 0 : index
      %108 = vector.load %arg9[%c0_46, %c0_47] : memref<8x32xf32, #tpu.memory_space<vmem>>, vector<8x32xf32>
      %c0_48 = arith.constant 0 : index
      %109 = memref.load %arg11[%c0_48] : memref<1xf32, #tpu.memory_space<smem>>
      %cst_49 = arith.constant 8.000000e+00 : f32
      %110 = arith.divf %109, %cst_49 : f32
      %c0_50 = arith.constant 0 : index
      %111 = memref.load %arg10[%c0_50] : memref<2xf32, #tpu.memory_space<smem>>
      memref.store %110, %arg10[%c0_50] : memref<2xf32, #tpu.memory_space<smem>>
      %112 = arith.mulf %107, %107 : vector<8x32xf32>
      %113 = vector.shape_cast %112 : vector<8x32xf32> to vector<1x8x32xf32>
      %cst_51 = arith.constant dense<0.000000e+00> : vector<1xf32>
      %114 = vector.multi_reduction <add>, %113, %cst_51 [1, 2] : vector<1x8x32xf32> to vector<1xf32>
      %115 = vector.shape_cast %114 : vector<1xf32> to vector<1x1x1xf32>
      %116 = vector.extract %115[0, 0, 0] : f32 from vector<1x1x1xf32>
      %117 = arith.mulf %108, %108 : vector<8x32xf32>
      %118 = vector.shape_cast %117 : vector<8x32xf32> to vector<1x8x32xf32>
      %cst_52 = arith.constant dense<0.000000e+00> : vector<1xf32>
      %119 = vector.multi_reduction <add>, %118, %cst_52 [1, 2] : vector<1x8x32xf32> to vector<1xf32>
      %120 = vector.shape_cast %119 : vector<1xf32> to vector<1x1x1xf32>
      %121 = vector.extract %120[0, 0, 0] : f32 from vector<1x1x1xf32>
      %122 = arith.addf %116, %121 : f32
      %c1 = arith.constant 1 : index
      %123 = memref.load %arg10[%c1] : memref<2xf32, #tpu.memory_space<smem>>
      memref.store %122, %arg10[%c1] : memref<2xf32, #tpu.memory_space<smem>>
    } else {
    }
    return
  }
  func.func @transform_0(%arg0: i32) -> (i32, i32) {
    %c0_i32 = arith.constant 0 : i32
    %c0_i32_0 = arith.constant 0 : i32
    return %arg0, %c0_i32 : i32, i32
  }
  func.func @transform_1(%arg0: i32) -> (i32, i32) {
    %c0_i32 = arith.constant 0 : i32
    %c0_i32_0 = arith.constant 0 : i32
    return %arg0, %c0_i32 : i32, i32
  }
  func.func @transform_2(%arg0: i32) -> (i32, i32) {
    %c0_i32 = arith.constant 0 : i32
    %c0_i32_0 = arith.constant 0 : i32
    return %arg0, %c0_i32 : i32, i32
  }
  func.func @transform_3(%arg0: i32) -> (i32, i32) {
    %c0_i32 = arith.constant 0 : i32
    %c0_i32_0 = arith.constant 0 : i32
    return %arg0, %c0_i32 : i32, i32
  }
  func.func @transform_4(%arg0: i32) -> (i32, i32) {
    %c0_i32 = arith.constant 0 : i32
    %c0_i32_0 = arith.constant 0 : i32
    return %arg0, %c0_i32 : i32, i32
  }
  func.func @transform_5(%arg0: i32) -> (i32, i32) {
    %c0_i32 = arith.constant 0 : i32
    %c0_i32_0 = arith.constant 0 : i32
    %c0_i32_1 = arith.constant 0 : i32
    return %c0_i32, %c0_i32_0 : i32, i32
  }
  func.func @transform_6(%arg0: i32) -> (i32, i32) {
    %c0_i32 = arith.constant 0 : i32
    %c0_i32_0 = arith.constant 0 : i32
    %c0_i32_1 = arith.constant 0 : i32
    return %c0_i32, %c0_i32_0 : i32, i32
  }
  func.func @transform_7(%arg0: i32) -> (i32, i32) {
    %c0_i32 = arith.constant 0 : i32
    %c0_i32_0 = arith.constant 0 : i32
    %c0_i32_1 = arith.constant 0 : i32
    return %c0_i32, %c0_i32_0 : i32, i32
  }
  func.func @transform_8(%arg0: i32) -> (i32, i32) {
    %c0_i32 = arith.constant 0 : i32
    %c0_i32_0 = arith.constant 0 : i32
    %c0_i32_1 = arith.constant 0 : i32
    return %c0_i32, %c0_i32_0 : i32, i32
  }
  func.func @transform_9(%arg0: i32) -> i32 {
    %c0_i32 = arith.constant 0 : i32
    %c0_i32_0 = arith.constant 0 : i32
    return %c0_i32 : i32
  }
}

</mosaic_0001>

<bundles_post_ra>
// kernel: tpu_custom_call.1
= control target key start
LH: loop header
LB: loop body
LE: loop exit
PB: predicated region body
PF: predicated region fallthrough
CT: control target
= control target key end

     0   :  { %14 = vsyncpa [#allocation4], 0  ;;  %s969_s0 = inlined_call_operand.vmem [shape: s32[8,1], index: 0, kind: input, shape index: {}]   ;;  %s970_s1 = inlined_call_operand.vmem [shape: s32[8,1], index: 1, kind: input, shape index: {}]   ;;  %s971_s2 = inlined_call_operand.vmem [shape: s32[8,1], index: 2, kind: input, shape index: {}]   ;;  %s972_s3 = inlined_call_operand.vmem [shape: f32[8,1], index: 3, kind: input, shape index: {}]   ;;  %s973_s4 = inlined_call_operand.vmem [shape: f32[8,1], index: 4, kind: input, shape index: {}]   ;;  %s974_s5 = inlined_call_operand.vmem [shape: f32[32,32], index: 5, kind: input, shape index: {}]   ;;  %s975_s6 = inlined_call_operand.vmem [shape: f32[32,32], index: 6, kind: input, shape index: {}]   ;;  %s976_s7 = inlined_call_operand.hbm [shape: f32[8,32], index: 7, kind: input, shape index: {}]   ;;  %s977_s8 = inlined_call_operand.vmem [shape: f32[8,32], index: 8, kind: input, shape index: {}]   ;;  %s978_s9 = inlined_call_operand.hbm [shape: f32[2], index: 9, kind: output, shape index: {}]  }
   0x1   :  { %15 = vsyncpa [#allocation5], 0  ;;  %s819_s30 = smov [#allocation3]   ;;  %s783_s13 = scalar_lea.hbm %s976_s7, 128 }
   0x2   :  { %s36_s10 = sshll.u32 %s819_s30, 4  ;;  %p784_p0 = scmp.ne.s32.totalorder %s976_s7, %s783_s13  ;;  %s37_s10 = int_to_ptr.vmem [resolvable:$true] %s36_s10 }
   0x3   :  { %p787_p1 = scmp.lt.u32.totalorder %s783_s13, %s976_s7 }
   0x5   :  { %p789_p2 = pnand %p787_p1, %p784_p0 }
   0x7   :  { %792 = shalt.err (!%p789_p2)
}
   0x8   :  { %s793_s18 = scalar_lea.vmem %s37_s10, 128  ;;  %p798_p4 = scmp.lt.s32.totalorder %s37_s10, %s37_s10 }
   0x9   :  { %p794_p3 = scmp.ne.s32.totalorder %s37_s10, %s793_s18  ;;  %p799_p5 = scmp.lt.s32.totalorder %s793_s18, %s793_s18 }
   0xb   :  { %p800_p6 = por %p799_p5, %p798_p4 }
   0xd   :  { %p801_p7 = pnand %p800_p6, %p794_p3 }
   0xf   :  { %804 = shalt.err (!%p801_p7)
}
  0x10   :  { %39 = dma.hbm_to_vmem [thread:$0]  %s976_s7, 128, %s37_s10, [#allocation4]  }
  0x11   :  { %815 = dma.done.wait [#allocation4], 128  }
  0x12   :  { %816 = vsyncadd [#allocation4], 4294967168  ;;  %v820_v0 = vmov 0   ;;  %v821_v1 = vmov 0.0|0.0   ;;  %v51_v2 = vld [vmem:[%s969_s0] sm:$0xff]  ;;  %v75_v4 = vld [vmem:[%s974_s5 + $0x8] sm:$0xff]  ;;  %v54_v12 = vlaneseq }
  0x13   :  { %769 = vset.pattern.permute.xlu0 %v820_v0  ;;  %733 = vmatprep.subr.bf16.mxu0 %v821_v1  ;;  %v74_v3 = vld [vmem:[%s974_s5] sm:$0xff]  ;;  %v76_v5 = vld [vmem:[%s974_s5 + $0x10] sm:$0xff]  ;;  %v77_v6 = vld [vmem:[%s974_s5 + $0x18] sm:$0xff]  ;;  %vm822_vm0 = vmmov 0   ;;  %v823_v9 = vmov 0.0   ;;  %vm82_vm1 = vcmask 261120  }
  0x14   :  { %739 = vmatprep.subr.bf16.mxu1 %v821_v1  ;;  %770 = vset.pattern.permute.xlu1 %v820_v0  ;;  %v52_v7 = vld [vmem:[%s970_s1] sm:$0xff]  ;;  %v734_v8 = vpack.c.bf16 %v75_v4, %v74_v3  ;;  %v737_v10 = vpack.c.bf16 %v77_v6, %v76_v5  ;;  %v55_v13 = vand.u32 127, %v54_v12  ;;  %v79_v15 = vld [vmem:[%s975_s6 + $0x8] sm:$0xff]  ;;  %v80_v18 = vld [vmem:[%s975_s6 + $0x10] sm:$0xff]  ;;  %vm370_vm4 = vcmask 64512   ;;  %s805_s26 = scalar_lea.hbm %s978_s9, 16 }
  0x15   :  { %57 = vperm.xlu0 %769, %v51_v2   ;;  %687 = vmatprep.mubr.msk.f32.mxu0 %vm822_vm0, %v823_v9  ;;  %v53_v11 = vld [vmem:[%s971_s2] sm:$0xff]  ;;  %v81_v19 = vld [vmem:[%s975_s6 + $0x18] sm:$0xff]  ;;  %vm581_vm8 = vcmask 7168   ;;  %p806_p8 = scmp.ne.s32.totalorder %s978_s9, %s805_s26  ;;  %p809_p9 = scmp.lt.u32.totalorder %s805_s26, %s978_s9 }
  0x16   :  { %698 = vmatprep.mubr.msk.f32.mxu1 %vm822_vm0, %v823_v9  ;;  %735 = vmatpush3.bf16.msra.mxu0 %v734_v8  ;;  %v78_v14 = vld [vmem:[%s975_s6] sm:$0xff]  ;;  %v749_v22 = vpack.c.bf16 %v81_v19, %v80_v18  ;;  %v926_v24 = vld [vmem:[#allocation3] sm:$0xff] }
  0x17   :  { %741 = vmatpush3.bf16.msra.mxu1 %v734_v8  ;;  %736 = vmatprep.subr.bf16.mxu0 %v821_v1  ;;  %v746_v17 = vpack.c.bf16 %v79_v15, %v78_v14  ;;  %v934_v25 = vld [vmem:[%s977_s8] sm:$0xff]  ;;  %v606_v6 = vmul.f32 %v926_v24, %v926_v24  ;;  %p811_p10 = pnand %p809_p9, %p806_p8 }
  0x18   :  { %742 = vmatprep.subr.bf16.mxu1 %v821_v1  ;;  %69 = vperm.xlu1 %770, %v53_v11  }
  0x19   :  { %63 = vperm.xlu0 %769, %v52_v7   ;;  %v607_v7 = vsel %vm82_vm1, %v606_v6, 0.0 }
  0x1a   :  { %738 = vmatpush3.bf16.msra.mxu0 %v737_v10 }
  0x1b   :  { %744 = vmatpush3.bf16.msra.mxu1 %v737_v10  ;;  %745 = vmatprep.subr.bf16.mxu0 %v821_v1 }
  0x1c   :  { %751 = vmatprep.subr.bf16.mxu1 %v821_v1 }
  0x94   :  { %v58_v16 = vpop.permute.xlu0 %57 }
  0x95   :  { %vm59_vm2 = vcmp.eq.s32.totalorder %v55_v13, %v58_v16 }
  0x96   :  { %v645_v20 = vsel %vm59_vm2, 1.0, %v823_v9 }
  0x97   :  { %688 = vmatmul.mubr.msk.f32.vlgmr.msra.gmra.mrb[0].mxu0 %vm82_vm1, %v645_v20  ;;  %v70_v26 = vpop.permute.xlu1 %69 }
  0x98   :  { %747 = vmatpush3.bf16.msra.mxu0 %v746_v17  ;;  %v64_v21 = vpop.permute.xlu0 %63  ;;  %709 = vmatprep.mubr.msk.f32.mxu0 %vm822_vm0, %v823_v9  ;;  %vm71_vm5 = vcmp.eq.s32.totalorder %v55_v13, %v70_v26 }
  0x99   :  { %vm65_vm3 = vcmp.eq.s32.totalorder %v55_v13, %v64_v21  ;;  %748 = vmatprep.subr.bf16.mxu0 %v821_v1  ;;  %v647_v27 = vsel %vm71_vm5, 1.0, %v823_v9 }
  0x9a   :  { %v646_v23 = vsel %vm65_vm3, 1.0, %v823_v9 }
  0x9b   :  { %699 = vmatmul.mubr.msk.f32.vlgmr.msra.gmra.mrb[0].mxu1 %vm82_vm1, %v646_v23 }
  0x9c   :  { %750 = vmatpush3.bf16.msra.mxu0 %v749_v22  ;;  %753 = vmatpush3.bf16.msra.mxu1 %v746_v17 }
  0x9d   :  { %754 = vmatprep.subr.bf16.mxu1 %v821_v1  ;;  %720 = vmatprep.mubr.msk.f32.mxu1 %vm822_vm0, %v823_v9 }
  0x9e   :  { %723 = vmatprep.subr.mxu0 %v823_v9 }
  0x9f   :  { %710 = vmatmul.mubr.msk.f32.vlgmr.msra.gmra.mrb[2].mxu0 %vm82_vm1, %v646_v23 }
  0xa0   :  { %756 = vmatpush3.bf16.msra.mxu1 %v749_v22  ;;  %724 = vmatpush3.msra.mxu0 %v926_v24 }
  0xa1   :  { %725 = vmatprep.mubr.msk.f32.mxu0 %vm822_vm0, %v823_v9  ;;  %728 = vmatprep.subr.mxu1 %v823_v9 }
  0xa3   :  { %721 = vmatmul.mubr.msk.f32.vlgmr.msra.gmra.mrb[2].mxu1 %vm82_vm1, %v645_v20  ;;  %726 = vmatmul.mubr.msk.f32.vlgmr.msra.gmra.mrb[4].mxu0 %vm370_vm4, %v647_v27 }
  0xa4   :  { %729 = vmatpush3.msra.mxu1 %v934_v25  ;;  %730 = vmatprep.mubr.msk.f32.mxu1 %vm822_vm0, %v823_v9  ;;  %v557_v9 = vld [vmem:[%s972_s3] sm:$0xff] }
  0xa5   :  { %v558_v12 = vsub.f32 0.0, %v557_v9 }
  0xa7   :  { %731 = vmatmul.mubr.msk.f32.vlgmr.msra.gmra.mrb[4].mxu1 %vm370_vm4, %v647_v27 }
 0x16a   :  { %v152_v28 = vpop.f32.mrb[0].mxu0 }
 0x16b   :  { %v515_v29 = vmul.f32 %v152_v28, %v152_v28  ;;  %v689_v30 = vpop.f32.mrb[1].mxu0 }
 0x16d   :  { %v516_v31 = vsel %vm82_vm1, %v515_v29, 0.0 }
 0x16e   :  { %517 = vadd.xlane.f32.xlu1 %v516_v31  ;;  %v225_v32 = vpop.f32.mrb[0].mxu1  ;;  %v578_v31 = vld [vmem:[%s973_s4] sm:$0xff] }
 0x16f   :  { %v522_v33 = vmul.f32 %v225_v32, %v225_v32  ;;  %v700_v34 = vpop.f32.mrb[1].mxu1 }
 0x170   :  { %v617_v34 = vmul.f32 %v934_v25, %v934_v25 }
 0x171   :  { %v523_v35 = vsel %vm82_vm1, %v522_v33, 0.0 }
 0x172   :  { %v295_v36 = vpop.f32.mrb[2].mxu0  ;;  %524 = vadd.xlane.f32.xlu0 %v523_v35 }
 0x173   :  { %v529_v37 = vmul.f32 %v295_v36, %v295_v36  ;;  %v711_v38 = vpop.f32.mrb[3].mxu0 }
 0x175   :  { %v530_v39 = vsel %vm82_vm1, %v529_v37, 0.0 }
 0x176   :  { %v365_v40 = vpop.f32.mrb[2].mxu1  ;;  %531 = vadd.xlane.f32.xlu0 %v530_v39  ;;  %v440_v44 = vpop.f32.mrb[4].mxu0 }
 0x177   :  { %v536_v41 = vmul.f32 %v365_v40, %v365_v40  ;;  %v722_v42 = vpop.f32.mrb[3].mxu1  ;;  %v727_v46 = vpop.f32.mrb[5].mxu0 }
 0x179   :  { %v537_v43 = vsel %vm82_vm1, %v536_v41, 0.0 }
 0x17a   :  { %538 = vadd.xlane.f32.xlu1 %v537_v43  ;;  %v511_v45 = vpop.f32.mrb[4].mxu1 }
 0x17b   :  { %v732_v47 = vpop.f32.mrb[5].mxu1 }
 0x1fb   :  { %v518_v48 = vpop.xlane.xlu1 %517 }
 0x1fc   :  { %v519_v49 = vmax.f32 %v518_v48, 1e-24 }
 0x1fe   :  { %771 = vrsqrt.f32 %v519_v49 }
 0x1ff   :  { %v525_v50 = vpop.xlane.xlu0 %524 }
 0x200   :  { %v526_v51 = vmax.f32 %v525_v50, 1e-24 }
 0x202   :  { %773 = vrsqrt.f32 %v526_v51 }
 0x203   :  { %v532_v52 = vpop.xlane.xlu0 %531 }
 0x204   :  { %v533_v53 = vmax.f32 %v532_v52, 1e-24 }
 0x206   :  { %775 = vrsqrt.f32 %v533_v53 }
 0x207   :  { %v539_v54 = vpop.xlane.xlu1 %538 }
 0x208   :  { %v772_v55 = vpop.eup %771  ;;  %v540_v56 = vmax.f32 %v539_v54, 1e-24 }
 0x209   :  { %v521_v57 = vmul.f32 %v772_v55, %v152_v28 }
 0x20a   :  { %777 = vrsqrt.f32 %v540_v56 }
 0x20b   :  { %v543_v58 = vmul.f32 %v521_v57, %v440_v44 }
 0x20c   :  { %v774_v59 = vpop.eup %773 }
 0x20d   :  { %v528_v60 = vmul.f32 %v774_v59, %v225_v32 }
 0x20f   :  { %v548_v61 = vmul.f32 %v528_v60, %v511_v45 }
 0x210   :  { %v776_v62 = vpop.eup %775 }
 0x211   :  { %v535_v63 = vmul.f32 %v776_v62, %v295_v36  ;;  %v618_v36 = vsel %vm82_vm1, %v617_v34, 0.0 }
 0x213   :  { %v544_v0 = vmul.f32 %v543_v58, %v535_v63 }
 0x214   :  { %v778_v1 = vpop.eup %777 }
 0x215   :  { %v545_v2 = vsel %vm82_vm1, %v544_v0, 0.0  ;;  %v542_v3 = vmul.f32 %v778_v1, %v365_v40 }
 0x216   :  { %546 = vadd.xlane.f32.xlu0 %v545_v2 }
 0x217   :  { %v549_v4 = vmul.f32 %v548_v61, %v542_v3 }
 0x219   :  { %v550_v5 = vsel %vm82_vm1, %v549_v4, 0.0 }
 0x21a   :  { %551 = vadd.xlane.f32.xlu1 %v550_v5 }
 0x21e   :  { %608 = vadd.xlane.f32.xlu1 %v607_v7 }
 0x2a3   :  { %v547_v8 = vpop.xlane.xlu0 %546 }
 0x2a7   :  { %v552_v10 = vpop.xlane.xlu1 %551 }
 0x2a8   :  { %v553_v11 = vadd.f32 %v552_v10, %v547_v8 }
 0x2aa   :  { %v554_v13 = vmul.f32 0.5, %v553_v11 }
 0x2ab   :  { %v609_v37 = vpop.xlane.xlu1 %608 }
 0x2ac   :  { %v654_v14 = vclamps-f32 %v554_v13, 20.0  ;;  %v610_v38 = vrot.slane %v609_v37, 4 }
 0x2ae   :  { %v559_v15 = vmul.f32 %v654_v14, %v558_v12  ;;  %v611_v39 = vadd.f32 %v610_v38, %v609_v37 }
 0x2b0   :  { %v563_v16 = vand.u32 2147483647, %v559_v15  ;;  %v560_v28 = vmax.f32 %v559_v15, 0.0  ;;  %vm561_vm7 = vcmp.ne.f32.partialorder %v559_v15, %v559_v15  ;;  %v612_v40 = vrot.slane %v611_v39, 2 }
 0x2b2   :  { %v564_v17 = vsub.f32 0.0, %v563_v16  ;;  %v613_v44 = vadd.f32 %v612_v40, %v611_v39 }
 0x2b4   :  { %v565_v18 = vmul.f32 1.442695, %v564_v17  ;;  %v614_v50 = vrot.slane %v613_v44, 1 }
 0x2b6   :  { %779 = vpow2.f32 %v565_v18  ;;  %v615_v54 = vadd.f32 %v614_v50, %v613_v44 }
 0x2c0   :  { %v780_v19 = vpop.eup %779 }
 0x2c1   :  { %v567_v20 = vadd.f32 1.0, %v780_v19  ;;  %v570_v21 = vmul.f32 -0.5, %v780_v19  ;;  %v573_v23 = vand.u32 2147483647, %v780_v19 }
 0x2c3   :  { %781 = vlog2.f32 %v567_v20  ;;  %v571_v22 = vadd.f32 1.0, %v570_v21  ;;  %vm574_vm6 = vcmp.lt.f32.partialorder %v573_v23, 0.0004427343 }
 0x2c5   :  { %v572_v27 = vmul.f32 %v780_v19, %v571_v22 }
 0x2cd   :  { %v782_v24 = vpop.eup %781 }
 0x2ce   :  { %v569_v26 = vmul.f32 0.6931472, %v782_v24 }
 0x2d0   :  { %v575_v29 = vsel %vm574_vm6, %v572_v27, %v569_v26 }
 0x2d1   :  { %v576_v30 = vadd.f32 %v575_v29, %v560_v28 }
 0x2d3   :  { %v577_v32 = vsel %vm561_vm7, %v559_v15, %v576_v30 }
 0x2d4   :  { %v579_v33 = vmul.f32 %v578_v31, %v577_v32 }
 0x2d6   :  { %v582_v35 = vsel %vm581_vm8, %v579_v33, 0.0 }
 0x2d7   :  { %583 = vadd.xlane.f32.xlu0 %v582_v35 }
 0x2db   :  { %619 = vadd.xlane.f32.xlu0 %v618_v36 }
 0x364   :  { %v584_v41 = vpop.xlane.xlu0 %583 }
 0x365   :  { %v585_v42 = vrot.slane %v584_v41, 4 }
 0x367   :  { %v586_v43 = vadd.f32 %v585_v42, %v584_v41 }
 0x368   :  { %v620_v45 = vpop.xlane.xlu0 %619 }
 0x369   :  { %v587_v46 = vrot.slane %v586_v43, 2  ;;  %v621_v47 = vrot.slane %v620_v45, 4 }
 0x36b   :  { %v622_v48 = vadd.f32 %v621_v47, %v620_v45  ;;  %v588_v49 = vadd.f32 %v587_v46, %v586_v43 }
 0x36d   :  { %v623_v25 = vrot.slane %v622_v48, 2  ;;  %v589_v51 = vrot.slane %v588_v49, 1 }
 0x36f   :  { %v624_v52 = vadd.f32 %v623_v25, %v622_v48  ;;  %v590_v53 = vadd.f32 %v589_v51, %v588_v49 }
 0x371   :  { %757 = vpush %v590_v53  ;;  %v625_v55 = vrot.slane %v624_v52, 1 }
 0x372   :  { %759 = vpush %v615_v54 }
 0x373   :  { %v626_v56 = vadd.f32 %v625_v55, %v624_v52 }
 0x375   :  { %761 = vpush %v626_v56 }
 0x3a2   :  { %s758_s4 = spop %757 }
 0x3a3   :  { %s603_s20 = smul.f32 0.125, %s758_s4  ;;  %s760_s21 = spop %759 }
 0x3a5   :  { %605 = sst [smem:[#allocation6]] %s603_s20 }
 0x3a6   :  { %s762_s22 = spop %761 }
 0x3a7   :  { %s628_s23 = sadd.f32 %s762_s22, %s760_s21 }
 0x3a9   :  { %630 = sst [smem:[#allocation6 + $0x1]] %s628_s23 }
 0x3aa   :  { %814 = shalt.err (!%p811_p10)
}
 0x3ab   :  { %s824_s30 = smov [#allocation6]  }
 0x3ac   :  { %638 = dma.smem_to_hbm %s824_s30, 16, %s978_s9, [#allocation5]  }
 0x3ad   :  { %817 = dma.done.wait [#allocation5], 16  }
 0x3ae   :  { %818 = vsyncadd [#allocation5], 4294967280 }
 0x3af   :  { %642 = sfence }
 0x3b0   :  { %643 = vsyncpa [#allocation4], 1 }
 0x3b1   :  { %644 = vsyncpa [#allocation5], 1 }

</bundles_post_ra>
